<compile_context>
chip_gen: v5e
topology: v5e:2x2
jax: 0.10.0
libtpu: 0.0.40
codegen_flags: <defaults>
</compile_context>

<pallas_src>
import functools

import jax
import jax.numpy as jnp
from jax import lax
from jax.experimental import pallas as pl
from jax.experimental.pallas import tpu as pltpu


def _lsa_kernel(*refs, bb, t_pad, t_valid, n_taps, has_mask):
    if has_mask:
        (q_ref, v_ref, x_ref, m_ref,
         wq_ref, wv_ref, wf_ref, wa_ref, b_ref,
         ctx_ref, wts_ref) = refs
    else:
        (q_ref, v_ref, x_ref,
         wq_ref, wv_ref, wf_ref, wa_ref, b_ref,
         ctx_ref, wts_ref) = refs
        m_ref = None

    # hoist weight loads (constant across the unrolled per-row loop)
    wv = wv_ref[...]                                   # (A, V)      compute dtype
    wf = wf_ref[...]                                   # (A, K*Cin)  f32
    wa = wa_ref[...]                                   # (1, A)      f32

    # query projection (+ bias), directly in the transposed (A, BB) layout:
    # contraction over H on the minor dim of both operands (q @ k.T pattern).
    qbias = lax.dot_general(
        wq_ref[...], q_ref[...], (((1,), (1,)), ((), ())),
        preferred_element_type=jnp.float32) + b_ref[...]               # (A, BB)

    # K shifted windows of the padded alignment history, built in VMEM
    # (no HBM im2col tensor):  xs[b, k*Cin + c, t] = x_pad[b, c, t + k]
    x = x_ref[...]                                                     # (BB, Cin, Tpad+K-1)
    xs = jnp.concatenate([x[:, :, k:k + t_pad] for k in range(n_taps)],
                         axis=1)                                       # (BB, K*Cin, Tpad)

    v_all = v_ref[...]                                                 # (BB, Tpad, V)

    rows = []
    for b in range(bb):                                                # static unroll
        # value projection for row b: (A, V) x (Tpad, V)^T -> (A, Tpad), f32 acc
        vp = lax.dot_general(wv, v_all[b], (((1,), (1,)), ((), ())),
                             preferred_element_type=jnp.float32)
        # location conv + location_proj folded into one contraction:
        # (A, K*Cin) @ (K*Cin, Tpad) -> (A, Tpad)
        loc = jnp.dot(wf, xs[b], preferred_element_type=jnp.float32)
        e = jnp.tanh(vp + loc + qbias[:, b:b + 1])                     # (A, Tpad)
        # score reduction over A on the MXU: (1, A) @ (A, Tpad) -> (1, Tpad)
        rows.append(jnp.dot(wa, e, preferred_element_type=jnp.float32))
    scores = jnp.concatenate(rows, axis=0)                             # (BB, Tpad) f32

    if has_mask:
        scores = scores + m_ref[...]               # additive mask: 0 or -1e30
    elif t_valid < t_pad:
        # mask the padded time tail (built in-kernel: no HBM mask stream)
        pad_tail = lax.broadcasted_iota(jnp.int32, (bb, t_pad), 1) >= t_valid
        scores = jnp.where(pad_tail, jnp.float32(-1e30), scores)

    # softmax over T (lane axis); exact reciprocal (see review: alignments feed
    # back across decoder steps, so avoid approximate-reciprocal drift).
    m = jnp.max(scores, axis=-1, keepdims=True)
    ex = jnp.exp(scores - m)
    wts = ex / jnp.sum(ex, axis=-1, keepdims=True)                     # (BB, Tpad) f32

    # context via batched MXU matmul: (BB, 1, Tpad) @ (BB, Tpad, V) -> (BB, 1, V)
    ctx = jnp.einsum('bqt,btv->bqv', wts.astype(v_all.dtype)[:, None, :],
                     v_all, preferred_element_type=jnp.float32)

    ctx_ref[...] = ctx.reshape(bb, v_all.shape[-1]).astype(ctx_ref.dtype)
    wts_ref[...] = wts.astype(wts_ref.dtype)


def location_sensitive_attention(query, value, last_align, params, mask=None,
                                 block_b=None, compute_dtype=jnp.bfloat16):
    """params = (Wq (H,A), Wv (V,A), Wconv (Cf,2,K) [PyTorch OIH], Wloc (Cf,A),
    Wa (A,1), bias (A,)).  Linear weights are stored input-major (PyTorch weight.T).

    query: (B, H) f32, value: (B, T, V), last_align: (B, 2, T) NCW,
    mask: optional (B, T) bool, True = masked out.
    Returns (context (B, V) f32, alignment_weights (B, T) f32).
    """
    wq, wv, wconv, wloc, wa, bias = params
    B, H = query.shape
    _, T, V = value.shape
    _, Cin, K = wconv.shape
    A = wq.shape[1]
    padn = K // 2
    K2 = K * Cin
    has_mask = mask is not None

    # ---- time padding: multiple of 8 (only when needed; tail masked in-kernel) ----
    Tpad = ((T + 7) // 8) * 8
    Tal = Tpad + 2 * padn                     # 'same'-padded alignment length

    # ---- weight prep (tiny tensors; pure layout glue — all FLOPs stay in-kernel
    #      except this one-off K2*A fold of conv * location_proj) ----
    wq_t = jnp.asarray(wq, jnp.float32).T                              # (A, H)
    wv_t = jnp.asarray(wv, compute_dtype).T                            # (A, V)   bf16
    wfold = jnp.einsum('fck,fa->kca', jnp.asarray(wconv, jnp.float32),
                       jnp.asarray(wloc, jnp.float32)).reshape(K2, A)
    wf_t = wfold.T                                                     # (A, K2)  f32
    wa_t = jnp.asarray(wa, jnp.float32).reshape(1, A)                  # (1, A)
    bias_c = jnp.asarray(bias, jnp.float32).reshape(A, 1)              # (A, 1)

    # ---- generation-aware batch blocking & VMEM budget ----
    try:
        info = pltpu.get_tpu_info()
        vmem_cap = int(getattr(info, "vmem_capacity_bytes", 0)) or (64 << 20)
    except Exception:  # pragma: no cover - conservative fallback (v7x-sized)
        vmem_cap = 64 << 20
    bv = jnp.dtype(compute_dtype).itemsize
    per_row = (2 * (Tpad * V * bv                # value block (double buffered)
                    + Cin * Tal * 4              # alignment history
                    + (Tpad * 4 if has_mask else 0)
                    + H * 4                      # query
                    + (V + Tpad) * 4)            # outputs
               + K2 * Tpad * 4                   # in-kernel shifted-window stack
               + Tpad * V * bv)                  # headroom for the context matmul
    fixed = 8 * A * Tpad * 4 + 4 * A * (H + V + K2 + 2) * 4
    bb_cap = max(1, int((0.55 * vmem_cap - fixed) // per_row))
    bb_cap = min(bb_cap, 64)                     # bound trace-time unrolling
    if block_b is not None:
        bb_cap = min(bb_cap, int(block_b))
    if B <= bb_cap:
        BB = B                                   # single block: no batch padding
    else:
        BB = max(8, (bb_cap // 8) * 8)           # split blocks must be 8-aligned
        for cand in range(BB, 7, -8):            # prefer a divisor of B (no value pad)
            if B % cand == 0:
                BB = cand
                break
    n_blocks = pl.cdiv(B, BB)
    Bp = n_blocks * BB

    # ---- input prep ----
    q_p = jnp.asarray(query, jnp.float32)
    # NOTE: in a real decoder loop, cast value to bf16 once outside the loop.
    v_p = jnp.asarray(value, compute_dtype)
    x_p = jnp.pad(jnp.asarray(last_align, jnp.float32),
                  ((0, Bp - B), (0, 0), (padn, padn + (Tpad - T))))    # (Bp, Cin, Tal)
    if Bp != B or Tpad != T:
        q_p = jnp.pad(q_p, ((0, Bp - B), (0, 0)))
        v_p = jnp.pad(v_p, ((0, Bp - B), (0, Tpad - T), (0, 0)))
    m_p = None
    if has_mask:
        madd = jnp.where(mask, jnp.float32(-1e30), jnp.float32(0.0))
        m_p = jnp.pad(madd, ((0, Bp - B), (0, Tpad - T)),
                      constant_values=jnp.float32(-1e30))

    kernel = functools.partial(_lsa_kernel, bb=BB, t_pad=Tpad, t_valid=T,
                               n_taps=K, has_mask=has_mask)

    in_specs = [
        pl.BlockSpec((BB, H), lambda i: (i, 0)),            # query
        pl.BlockSpec((BB, Tpad, V), lambda i: (i, 0, 0)),   # value (encoder memory)
        pl.BlockSpec((BB, Cin, Tal), lambda i: (i, 0, 0)),  # padded alignment history
    ]
    inputs = [q_p, v_p, x_p]
    if has_mask:
        in_specs.append(pl.BlockSpec((BB, Tpad), lambda i: (i, 0)))
        inputs.append(m_p)
    in_specs += [
        pl.BlockSpec((A, H), lambda i: (0, 0)),             # Wq^T
        pl.BlockSpec((A, V), lambda i: (0, 0)),             # Wv^T (bf16)
        pl.BlockSpec((A, K2), lambda i: (0, 0)),            # folded conv+loc weights^T
        pl.BlockSpec((1, A), lambda i: (0, 0)),             # aligin_proj^T
        pl.BlockSpec((A, 1), lambda i: (0, 0)),             # bias column
    ]
    inputs += [wq_t, wv_t, wf_t, wa_t, bias_c]

    vmem_limit = int(min(max(32 << 20, int(0.9 * vmem_cap)), 128 << 20))

    ctx, wts = pl.pallas_call(
        kernel,
        out_shape=(jax.ShapeDtypeStruct((Bp, V), jnp.float32),
                   jax.ShapeDtypeStruct((Bp, Tpad), jnp.float32)),
        grid=(n_blocks,),
        in_specs=in_specs,
        out_specs=(pl.BlockSpec((BB, V), lambda i: (i, 0)),
                   pl.BlockSpec((BB, Tpad), lambda i: (i, 0))),
        compiler_params=pltpu.CompilerParams(
            dimension_semantics=("parallel",),
            vmem_limit_bytes=vmem_limit),
    )(*inputs)

    return ctx[:B], wts[:B, :T]


def _reference(query, value, last_align, params, mask=None):
    """Plain-JAX reference reproducing the PyTorch forward."""
    wq, wv, wconv, wloc, wa, bias = params
    K = wconv.shape[-1]
    padn = K // 2
    loc = jax.lax.conv_general_dilated(
        last_align, wconv, window_strides=(1,), padding=[(padn, padn)],
        dimension_numbers=('NCH', 'OIH', 'NCH'))              # (B, Cf, T)
    loc = jnp.transpose(loc, (0, 2, 1)) @ wloc                # (B, T, A)
    qp = query @ wq                                           # (B, A)
    vp = value @ wv                                           # (B, T, A)
    e = jnp.tanh(qp[:, None, :] + vp + loc + bias)            # (B, T, A)
    scores = (e @ wa)[..., 0]                                 # (B, T)
    if mask is not None:
        scores = jnp.where(mask, -jnp.inf, scores)
    wts = jax.nn.softmax(scores, axis=1)
    ctx = jnp.einsum('bt,btv->bv', wts, value)
    return ctx, wts


if __name__ == "__main__":
    H, V, A = 32, 16, 32          # rec_hidden_dim, value_dim, attention_dim
    Cf, K = 8, 7                  # location_conv_filter_size, kernel_size (odd)

    key = jax.random.PRNGKey(0)
    ks = jax.random.split(key, 6)
    # deterministic synthetic parameters (input-major linear weights == PyTorch weight.T)
    wq = jax.random.uniform(ks[0], (H, A), jnp.float32, -0.1, 0.1)
    wv = jax.random.uniform(ks[1], (V, A), jnp.float32, -0.1, 0.1)
    wconv = jax.random.uniform(ks[2], (Cf, 2, K), jnp.float32, -0.1, 0.1)
    wloc = jax.random.uniform(ks[3], (Cf, A), jnp.float32, -0.1, 0.1)
    wa = jax.random.uniform(ks[4], (A, 1), jnp.float32, -0.1, 0.1)
    bias = jax.random.uniform(ks[5], (A,), jnp.float32, -0.1, 0.1)
    params = (wq, wv, wconv, wloc, wa, bias)

    def run_case(name, B, T, with_mask=False, block_b=None,
                 compute_dtype=jnp.bfloat16, tol=2e-2):
        kk = jax.random.fold_in(key, 1000 * B + T + (7 if with_mask else 0))
        kq, kv, ka, kc = jax.random.split(kk, 4)
        query = jax.random.normal(kq, (B, H), jnp.float32)
        value = jax.random.normal(kv, (B, T, V), jnp.float32)
        prev = jax.nn.softmax(jax.random.normal(ka, (B, T), jnp.float32), axis=-1)
        cum = jax.random.uniform(kc, (B, T), jnp.float32)
        last_align = jnp.stack([prev, cum], axis=1)           # (B, 2, T) NCW
        mask = None
        if with_mask:
            lens = jnp.maximum(T - 5 * jnp.arange(B), 3)
            mask = jnp.arange(T)[None, :] >= lens[:, None]    # True = masked out
        ctx, wts = location_sensitive_attention(
            query, value, last_align, params, mask=mask,
            block_b=block_b, compute_dtype=compute_dtype)
        jax.block_until_ready((ctx, wts))
        ctx_r, wts_r = _reference(query, value, last_align, params, mask=mask)
        assert ctx.shape == (B, V) and wts.shape == (B, T), name
        dc = float(jnp.max(jnp.abs(ctx - ctx_r)))
        dw = float(jnp.max(jnp.abs(wts - wts_r)))
        assert jnp.allclose(ctx, ctx_r, atol=tol, rtol=tol), f"{name}: ctx diff {dc}"
        assert jnp.allclose(wts, wts_r, atol=tol, rtol=tol), f"{name}: wts diff {dw}"

    # f32 compute path: tight tolerance validates the math exactly
    run_case("f32", B=2, T=16, compute_dtype=jnp.float32, tol=1e-4)
    # bf16 compute path (default; tolerance reflects bf16 value/Wv rounding)
    run_case("bf16", B=2, T=16, tol=2e-2)
    # masked (variable-length encoder outputs)
    run_case("bf16_mask", B=2, T=16, with_mask=True, tol=2e-2)
    # multi-block grid + batch padding + non-multiple-of-8 T (in-kernel tail mask)
    run_case("bf16_multiblock", B=12, T=13, block_b=8, tol=2e-2)

    print("KERNEL_OK")
</pallas_src>

<mosaic_0001>
module attributes {stable_mosaic.version = 11 : i64} {
  func.func @_lsa_kernel(%arg0: i32, %arg1: memref<2x32xf32, #tpu.memory_space<vmem>>, %arg2: memref<2x16x16xf32, #tpu.memory_space<vmem>>, %arg3: memref<2x2x22xf32, #tpu.memory_space<vmem>>, %arg4: memref<32x32xf32, #tpu.memory_space<vmem>>, %arg5: memref<32x16xf32, #tpu.memory_space<vmem>>, %arg6: memref<32x14xf32, #tpu.memory_space<vmem>>, %arg7: memref<1x32xf32, #tpu.memory_space<vmem>>, %arg8: memref<32x1xf32, #tpu.memory_space<vmem>>, %arg9: memref<2x16xf32, #tpu.memory_space<vmem>>, %arg10: memref<2x16xf32, #tpu.memory_space<vmem>>) attributes {dimension_semantics = [#tpu.dimension_semantics<parallel>], iteration_bounds = array<i64: 1>, scalar_prefetch = 0 : i64, scratch_operands = 0 : i64, tpu.core_type = #tpu.core_type<tc>, window_params = [{transform_indices = @transform_0, window_bounds = array<i64: 2, 32>}, {transform_indices = @transform_1, window_bounds = array<i64: 2, 16, 16>}, {transform_indices = @transform_2, window_bounds = array<i64: 2, 2, 22>}, {pipeline_mode = #tpu.pipeline_mode<synchronous>, transform_indices = @transform_3, window_bounds = array<i64: 32, 32>}, {pipeline_mode = #tpu.pipeline_mode<synchronous>, transform_indices = @transform_4, window_bounds = array<i64: 32, 16>}, {pipeline_mode = #tpu.pipeline_mode<synchronous>, transform_indices = @transform_5, window_bounds = array<i64: 32, 14>}, {pipeline_mode = #tpu.pipeline_mode<synchronous>, transform_indices = @transform_6, window_bounds = array<i64: 1, 32>}, {pipeline_mode = #tpu.pipeline_mode<synchronous>, transform_indices = @transform_7, window_bounds = array<i64: 32, 1>}, {transform_indices = @transform_8, window_bounds = array<i64: 2, 16>}, {transform_indices = @transform_9, window_bounds = array<i64: 2, 16>}]} {
    %c0 = arith.constant 0 : index
    %c0_0 = arith.constant 0 : index
    %0 = vector.load %arg5[%c0, %c0_0] : memref<32x16xf32, #tpu.memory_space<vmem>>, vector<32x16xf32>
    %c0_1 = arith.constant 0 : index
    %c0_2 = arith.constant 0 : index
    %1 = vector.load %arg6[%c0_1, %c0_2] : memref<32x14xf32, #tpu.memory_space<vmem>>, vector<32x14xf32>
    %c0_3 = arith.constant 0 : index
    %c0_4 = arith.constant 0 : index
    %2 = vector.load %arg7[%c0_3, %c0_4] : memref<1x32xf32, #tpu.memory_space<vmem>>, vector<1x32xf32>
    %c0_5 = arith.constant 0 : index
    %c0_6 = arith.constant 0 : index
    %3 = vector.load %arg4[%c0_5, %c0_6] : memref<32x32xf32, #tpu.memory_space<vmem>>, vector<32x32xf32>
    %c0_7 = arith.constant 0 : index
    %c0_8 = arith.constant 0 : index
    %4 = vector.load %arg1[%c0_7, %c0_8] : memref<2x32xf32, #tpu.memory_space<vmem>>, vector<2x32xf32>
    %cst = arith.constant dense<0.000000e+00> : vector<32x2xf32>
    %5 = tpu.matmul %3, %4, %cst {dimension_numbers = #tpu.dot_dimension_numbers<[1], [1], [0], [0], [0, 0, 1, 0], [], []>} : vector<32x32xf32>, vector<2x32xf32>, vector<32x2xf32> -> vector<32x2xf32>
    %c0_9 = arith.constant 0 : index
    %c0_10 = arith.constant 0 : index
    %6 = vector.load %arg8[%c0_9, %c0_10] : memref<32x1xf32, #tpu.memory_space<vmem>>, vector<32x1xf32>
    %7 = vector.broadcast %6 : vector<32x1xf32> to vector<32x2xf32>
    %8 = arith.addf %5, %7 : vector<32x2xf32>
    %c0_11 = arith.constant 0 : index
    %c0_12 = arith.constant 0 : index
    %c0_13 = arith.constant 0 : index
    %9 = vector.load %arg3[%c0_11, %c0_12, %c0_13] : memref<2x2x22xf32, #tpu.memory_space<vmem>>, vector<2x2x22xf32>
    %10 = vector.extract_strided_slice %9 {offsets = [0, 0, 0], sizes = [2, 2, 16], strides = [1, 1, 1]} : vector<2x2x22xf32> to vector<2x2x16xf32>
    %11 = vector.extract_strided_slice %9 {offsets = [0, 0, 1], sizes = [2, 2, 16], strides = [1, 1, 1]} : vector<2x2x22xf32> to vector<2x2x16xf32>
    %12 = vector.extract_strided_slice %9 {offsets = [0, 0, 2], sizes = [2, 2, 16], strides = [1, 1, 1]} : vector<2x2x22xf32> to vector<2x2x16xf32>
    %13 = vector.extract_strided_slice %9 {offsets = [0, 0, 3], sizes = [2, 2, 16], strides = [1, 1, 1]} : vector<2x2x22xf32> to vector<2x2x16xf32>
    %14 = vector.extract_strided_slice %9 {offsets = [0, 0, 4], sizes = [2, 2, 16], strides = [1, 1, 1]} : vector<2x2x22xf32> to vector<2x2x16xf32>
    %15 = vector.extract_strided_slice %9 {offsets = [0, 0, 5], sizes = [2, 2, 16], strides = [1, 1, 1]} : vector<2x2x22xf32> to vector<2x2x16xf32>
    %16 = vector.extract_strided_slice %9 {offsets = [0, 0, 6], sizes = [2, 2, 16], strides = [1, 1, 1]} : vector<2x2x22xf32> to vector<2x2x16xf32>
    %17 = tpu.concatenate %10, %11, %12, %13, %14, %15, %16 in 1 : vector<2x2x16xf32>, vector<2x2x16xf32>, vector<2x2x16xf32>, vector<2x2x16xf32>, vector<2x2x16xf32>, vector<2x2x16xf32>, vector<2x2x16xf32> -> vector<2x14x16xf32>
    %c0_14 = arith.constant 0 : index
    %c0_15 = arith.constant 0 : index
    %c0_16 = arith.constant 0 : index
    %18 = vector.load %arg2[%c0_14, %c0_15, %c0_16] : memref<2x16x16xf32, #tpu.memory_space<vmem>>, vector<2x16x16xf32>
    %19 = vector.extract_strided_slice %18 {offsets = [0, 0, 0], sizes = [1, 16, 16], strides = [1, 1, 1]} : vector<2x16x16xf32> to vector<1x16x16xf32>
    %20 = vector.shape_cast %19 : vector<1x16x16xf32> to vector<16x16xf32>
    %cst_17 = arith.constant dense<0.000000e+00> : vector<32x16xf32>
    %21 = tpu.matmul %0, %20, %cst_17 {dimension_numbers = #tpu.dot_dimension_numbers<[1], [1], [0], [0], [0, 0, 1, 0], [], []>} : vector<32x16xf32>, vector<16x16xf32>, vector<32x16xf32> -> vector<32x16xf32>
    %22 = vector.extract_strided_slice %17 {offsets = [0, 0, 0], sizes = [1, 14, 16], strides = [1, 1, 1]} : vector<2x14x16xf32> to vector<1x14x16xf32>
    %23 = vector.shape_cast %22 : vector<1x14x16xf32> to vector<14x16xf32>
    %cst_18 = arith.constant dense<0.000000e+00> : vector<32x16xf32>
    %24 = tpu.matmul %1, %23, %cst_18 {dimension_numbers = #tpu.dot_dimension_numbers<[1], [0], [0], [1], [0, 0, 1, 1], [], []>} : vector<32x14xf32>, vector<14x16xf32>, vector<32x16xf32> -> vector<32x16xf32>
    %25 = arith.addf %21, %24 : vector<32x16xf32>
    %26 = vector.extract_strided_slice %8 {offsets = [0, 0], sizes = [32, 1], strides = [1, 1]} : vector<32x2xf32> to vector<32x1xf32>
    %27 = vector.broadcast %26 : vector<32x1xf32> to vector<32x16xf32>
    %28 = arith.addf %25, %27 : vector<32x16xf32>
    %29 = math.tanh %28 : vector<32x16xf32>
    %cst_19 = arith.constant dense<0.000000e+00> : vector<1x16xf32>
    %30 = tpu.matmul %2, %29, %cst_19 {dimension_numbers = #tpu.dot_dimension_numbers<[1], [0], [0], [1], [0, 0, 1, 1], [], []>} : vector<1x32xf32>, vector<32x16xf32>, vector<1x16xf32> -> vector<1x16xf32>
    %31 = vector.extract_strided_slice %18 {offsets = [1, 0, 0], sizes = [1, 16, 16], strides = [1, 1, 1]} : vector<2x16x16xf32> to vector<1x16x16xf32>
    %32 = vector.shape_cast %31 : vector<1x16x16xf32> to vector<16x16xf32>
    %cst_20 = arith.constant dense<0.000000e+00> : vector<32x16xf32>
    %33 = tpu.matmul %0, %32, %cst_20 {dimension_numbers = #tpu.dot_dimension_numbers<[1], [1], [0], [0], [0, 0, 1, 0], [], []>} : vector<32x16xf32>, vector<16x16xf32>, vector<32x16xf32> -> vector<32x16xf32>
    %34 = vector.extract_strided_slice %17 {offsets = [1, 0, 0], sizes = [1, 14, 16], strides = [1, 1, 1]} : vector<2x14x16xf32> to vector<1x14x16xf32>
    %35 = vector.shape_cast %34 : vector<1x14x16xf32> to vector<14x16xf32>
    %cst_21 = arith.constant dense<0.000000e+00> : vector<32x16xf32>
    %36 = tpu.matmul %1, %35, %cst_21 {dimension_numbers = #tpu.dot_dimension_numbers<[1], [0], [0], [1], [0, 0, 1, 1], [], []>} : vector<32x14xf32>, vector<14x16xf32>, vector<32x16xf32> -> vector<32x16xf32>
    %37 = arith.addf %33, %36 : vector<32x16xf32>
    %38 = vector.extract_strided_slice %8 {offsets = [0, 1], sizes = [32, 1], strides = [1, 1]} : vector<32x2xf32> to vector<32x1xf32>
    %39 = vector.broadcast %38 : vector<32x1xf32> to vector<32x16xf32>
    %40 = arith.addf %37, %39 : vector<32x16xf32>
    %41 = math.tanh %40 : vector<32x16xf32>
    %cst_22 = arith.constant dense<0.000000e+00> : vector<1x16xf32>
    %42 = tpu.matmul %2, %41, %cst_22 {dimension_numbers = #tpu.dot_dimension_numbers<[1], [0], [0], [1], [0, 0, 1, 1], [], []>} : vector<1x32xf32>, vector<32x16xf32>, vector<1x16xf32> -> vector<1x16xf32>
    %43 = tpu.concatenate %30, %42 in 0 : vector<1x16xf32>, vector<1x16xf32> -> vector<2x16xf32>
    %cst_23 = arith.constant dense<0xFF800000> : vector<2xf32>
    %44 = vector.multi_reduction <maximumf>, %43, %cst_23 [1] : vector<2x16xf32> to vector<2xf32>
    %45 = vector.shape_cast %44 : vector<2xf32> to vector<2x1xf32>
    %46 = vector.broadcast %45 : vector<2x1xf32> to vector<2x16xf32>
    %47 = arith.subf %43, %46 : vector<2x16xf32>
    %48 = math.exp %47 : vector<2x16xf32>
    %cst_24 = arith.constant dense<0.000000e+00> : vector<2xf32>
    %49 = vector.multi_reduction <add>, %48, %cst_24 [1] : vector<2x16xf32> to vector<2xf32>
    %50 = vector.shape_cast %49 : vector<2xf32> to vector<2x1xf32>
    %51 = vector.broadcast %50 : vector<2x1xf32> to vector<2x16xf32>
    %52 = arith.divf %48, %51 : vector<2x16xf32>
    %53 = vector.shape_cast %52 : vector<2x16xf32> to vector<2x1x16xf32>
    "tpu.trace_start"() <{level = 10 : i32, message = "bqt,btv->bqv"}> : () -> ()
    %cst_25 = arith.constant dense<0.000000e+00> : vector<2x1x16xf32>
    %54 = tpu.matmul %53, %18, %cst_25 {dimension_numbers = #tpu.dot_dimension_numbers<[2], [1], [1], [2], [0, 0, 0, 1, 1, 2], [0], [0]>} : vector<2x1x16xf32>, vector<2x16x16xf32>, vector<2x1x16xf32> -> vector<2x1x16xf32>
    "tpu.trace_stop"() : () -> ()
    %55 = vector.shape_cast %54 : vector<2x1x16xf32> to vector<2x16xf32>
    %c0_26 = arith.constant 0 : index
    %c0_27 = arith.constant 0 : index
    %56 = vector.load %arg9[%c0_26, %c0_27] : memref<2x16xf32, #tpu.memory_space<vmem>>, vector<2x16xf32>
    tpu.vector_store %arg9[%c0_26, %c0_27], %55 {strides = array<i32>} : memref<2x16xf32, #tpu.memory_space<vmem>>, vector<2x16xf32>,
    %c0_28 = arith.constant 0 : index
    %c0_29 = arith.constant 0 : index
    %57 = vector.load %arg10[%c0_28, %c0_29] : memref<2x16xf32, #tpu.memory_space<vmem>>, vector<2x16xf32>
    tpu.vector_store %arg10[%c0_28, %c0_29], %52 {strides = array<i32>} : memref<2x16xf32, #tpu.memory_space<vmem>>, vector<2x16xf32>,
    return
  }
  func.func @transform_0(%arg0: i32) -> (i32, i32) {
    %c0_i32 = arith.constant 0 : i32
    %c0_i32_0 = arith.constant 0 : i32
    return %arg0, %c0_i32 : i32, i32
  }
  func.func @transform_1(%arg0: i32) -> (i32, i32, i32) {
    %c0_i32 = arith.constant 0 : i32
    %c0_i32_0 = arith.constant 0 : i32
    %c0_i32_1 = arith.constant 0 : i32
    return %arg0, %c0_i32, %c0_i32_0 : i32, i32, i32
  }
  func.func @transform_2(%arg0: i32) -> (i32, i32, i32) {
    %c0_i32 = arith.constant 0 : i32
    %c0_i32_0 = arith.constant 0 : i32
    %c0_i32_1 = arith.constant 0 : i32
    return %arg0, %c0_i32, %c0_i32_0 : i32, i32, i32
  }
  func.func @transform_3(%arg0: i32) -> (i32, i32) {
    %c0_i32 = arith.constant 0 : i32
    %c0_i32_0 = arith.constant 0 : i32
    %c0_i32_1 = arith.constant 0 : i32
    return %c0_i32, %c0_i32_0 : i32, i32
  }
  func.func @transform_4(%arg0: i32) -> (i32, i32) {
    %c0_i32 = arith.constant 0 : i32
    %c0_i32_0 = arith.constant 0 : i32
    %c0_i32_1 = arith.constant 0 : i32
    return %c0_i32, %c0_i32_0 : i32, i32
  }
  func.func @transform_5(%arg0: i32) -> (i32, i32) {
    %c0_i32 = arith.constant 0 : i32
    %c0_i32_0 = arith.constant 0 : i32
    %c0_i32_1 = arith.constant 0 : i32
    return %c0_i32, %c0_i32_0 : i32, i32
  }
  func.func @transform_6(%arg0: i32) -> (i32, i32) {
    %c0_i32 = arith.constant 0 : i32
    %c0_i32_0 = arith.constant 0 : i32
    %c0_i32_1 = arith.constant 0 : i32
    return %c0_i32, %c0_i32_0 : i32, i32
  }
  func.func @transform_7(%arg0: i32) -> (i32, i32) {
    %c0_i32 = arith.constant 0 : i32
    %c0_i32_0 = arith.constant 0 : i32
    %c0_i32_1 = arith.constant 0 : i32
    return %c0_i32, %c0_i32_0 : i32, i32
  }
  func.func @transform_8(%arg0: i32) -> (i32, i32) {
    %c0_i32 = arith.constant 0 : i32
    %c0_i32_0 = arith.constant 0 : i32
    return %arg0, %c0_i32 : i32, i32
  }
  func.func @transform_9(%arg0: i32) -> (i32, i32) {
    %c0_i32 = arith.constant 0 : i32
    %c0_i32_0 = arith.constant 0 : i32
    return %arg0, %c0_i32 : i32, i32
  }
}

</mosaic_0001>

<bundles_post_ra>
// kernel: tpu_custom_call.1
= control target key start
LH: loop header
LB: loop body
LE: loop exit
PB: predicated region body
PF: predicated region fallthrough
CT: control target
= control target key end

     0   :  { %15 = vsyncpa [#allocation3], 0  ;;  %vm71_vm0 = vcmask 261120   ;;  %s671_s13 = smov 124   ;;  %s672_s19 = smov 127   ;;  %v673_v6 = vmov 0   ;;  %s908_s0 = inlined_call_operand.vmem [shape: f32[2,32], index: 0, kind: input, shape index: {}]   ;;  %s909_s1 = inlined_call_operand.vmem [shape: f32[2,16,16], index: 1, kind: input, shape index: {}]   ;;  %s910_s2 = inlined_call_operand.vmem [shape: f32[2,2,22], index: 2, kind: input, shape index: {}]   ;;  %s911_s3 = inlined_call_operand.vmem [shape: f32[32,32], index: 3, kind: input, shape index: {}]   ;;  %s912_s4 = inlined_call_operand.vmem [shape: f32[32,16], index: 4, kind: input, shape index: {}]   ;;  %s913_s5 = inlined_call_operand.vmem [shape: f32[32,14], index: 5, kind: input, shape index: {}]   ;;  %s914_s6 = inlined_call_operand.vmem [shape: f32[1,32], index: 6, kind: input, shape index: {}]   ;;  %s915_s7 = inlined_call_operand.vmem [shape: f32[32,1], index: 7, kind: input, shape index: {}]   ;;  %s916_s8 = inlined_call_operand.hbm [shape: f32[2,16], index: 8, kind: output, shape index: {0}]   ;;  %s917_s9 = inlined_call_operand.hbm [shape: f32[2,16], index: 9, kind: output, shape index: {1}]  }
   0x1   :  { %v116_v0 = vld [vmem:[%s910_s2] sm:$0x3]  ;;  %v44_v4 = vld [vmem:[%s911_s3 + $0x10] sm:$0xff]  ;;  %v45_v5 = vld [vmem:[%s911_s3 + $0x18] sm:$0xff]  ;;  %593 = vset.pattern.permute.xlu0 %v673_v6  ;;  %594 = vset.pattern.permute.xlu1 %v673_v6 }
   0x2   :  { %v46_v1 = vld [vmem:[%s908_s0] sm:$0x3]  ;;  %144 = vrot.lane.b32.xlu0 %v116_v0, %s671_s13  ;;  %v120_v2 = vrot.slane %v116_v0, 6  ;;  %v128_v7 = vrot.slane %v116_v0, 4 }
   0x3   :  { %550 = vmatpush.xpose.msk.msra.mxu0 %vm71_vm0, %v46_v1  ;;  %v42_v3 = vld [vmem:[%s911_s3] sm:$0xff]  ;;  %581 = vmatpush.xpose.msk.msra.mxu2 %vm71_vm0, %v46_v1 }
   0x4   :  { %582 = vmatpush.xpose.msk.msra.mxu3 %vm71_vm0, %v46_v1  ;;  %122 = vrot.lane.b32.xlu1 %v120_v2, %s672_s19 }
   0x6   :  { %551 = vmatmul.msk.f32.vlgmr.msra.gmra.mxu0 %vm71_vm0, %v42_v3 }
   0x7   :  { %16 = vsyncpa [#allocation5], 0  ;;  %553 = vmatmul.msk.f32.vlgmr.msra.gmra.mxu2 %vm71_vm0, %v44_v4  ;;  %554 = vmatmul.msk.f32.vlgmr.msra.gmra.mxu3 %vm71_vm0, %v45_v5  ;;  %s674_s20 = smov 126   ;;  %s675_s21 = smov 123   ;;  %v43_v8 = vld [vmem:[%s911_s3 + $0x8] sm:$0xff]  ;;  %v136_v9 = vrot.slane %v116_v0, 2 }
   0x8   :  { %130 = vrot.lane.b32.xlu2 %v128_v7, %s674_s20  ;;  %s676_s24 = smov 122   ;;  %v50_v10 = vld [vmem:[%s915_s7 + $0x18] sm:$0xff]  ;;  %s677_s27 = smov 125   ;;  %v49_v11 = vld [vmem:[%s915_s7 + $0x10] sm:$0xff]  ;;  %v48_v12 = vld [vmem:[%s915_s7 + $0x8] sm:$0xff]  ;;  %vm224_vm1 = vcmask 130048  }
   0x9   :  { %595 = vset.pattern.permute.xlu2 %v673_v6  ;;  %v47_v13 = vld [vmem:[%s915_s7] sm:$0xff]  ;;  %v176_v14 = vld [vmem:[%s909_s1 + $0x8] sm:$0xff]  ;;  %v799_v18 = vld [vmem:[%s912_s4 + $0x10] sm:$0xff]  ;;  %vm162_vm2 = vcmask 1041408   ;;  %vm165_vm3 = vcmask 1043456   ;;  %vm168_vm4 = vcmask 1045504  }
   0xa   :  { %150 = vrot.lane.b32.xlu0 %v120_v2, %s675_s21  ;;  %560 = vmatpush.xpose.msk.msrb.mxu2 %vm224_vm1, %v176_v14  ;;  %v175_v15 = vld [vmem:[%s909_s1] sm:$0xff]  ;;  %v792_v17 = vld [vmem:[%s912_s4 + $0x8] sm:$0xff]  ;;  %v806_v21 = vld [vmem:[%s912_s4 + $0x18] sm:$0xff]  ;;  %vm179_vm5 = vcmask 113664   ;;  %v678_v48 = vmov 1   ;;  %vm437_vm6 = vcmask 1040384  }
   0xb   :  { %v785_v16 = vld [vmem:[%s912_s4] sm:$0xff]  ;;  %v826_v36 = vld [vmem:[%s913_s5 + $0x8] sm:$0xff]  ;;  %v836_v46 = vld [vmem:[%s913_s5 + $0x10] sm:$0xff]  ;;  %vm439_vm7 = vcmask 123904   ;;  %s536_s16 = sshll.u32 %s917_s9, 4  ;;  %s680_s17 = smov [#allocation2]   ;;  %s537_s16 = int_to_ptr.hbm [resolvable:$true] %s536_s16 }
   0xc   :  { %156 = vrot.lane.b32.xlu1 %v128_v7, %s676_s24  ;;  %v818_v30 = vld [vmem:[%s913_s5] sm:$0xff]  ;;  %v845_v49 = vld [vmem:[%s913_s5 + $0x18] sm:$0xff]  ;;  %v863_v61 = vld [vmem:[%s909_s1 + $0x10] sm:$0xff]  ;;  %s523_s0 = sshll.u32 %s680_s17, 4  ;;  %s525_s22 = sshll.u32 %s916_s8, 4  ;;  %vm513_vm12 = vcmask 1041409   ;;  %s524_s0 = int_to_ptr.vmem [resolvable:$true] %s523_s0  ;;  %s526_s22 = int_to_ptr.hbm [resolvable:$true] %s525_s22 }
   0xd   :  { %v117_v44 = vld [vmem:[%s910_s2 + $0x2] sm:$0x3]  ;;  %v856_v58 = vld [vmem:[%s909_s1 + $0x18] sm:$0xff] }
   0xe   :  { %552 = vmatmul.msk.f32.gmra.mxu0 %vm71_vm0, %v43_v8  ;;  %561 = vmatpush.xpose.msk.msrb.mxu2 %vm224_vm1, %v175_v15  ;;  %v121_v47 = vrot.slane %v117_v44, 6  ;;  %v129_v50 = vrot.slane %v117_v44, 4  ;;  %v137_v51 = vrot.slane %v117_v44, 2 }
   0xf   :  { %572 = vmatpush.xpose.msk.msrb.mxu0 %vm224_vm1, %v856_v58 }
  0x10   :  { %138 = vrot.lane.b32.xlu2 %v136_v9, %s677_s27 }
  0x11   :  { %562 = vmatmul.msk.f32.vlgmr.msrb.gmra.mxu2 %vm224_vm1, %v785_v16 }
  0x12   :  { %68 = vperm.xlu0 %593, %v50_v10   ;;  %482 = vmatpush.msra.mxu2 %v176_v14 }
  0x13   :  { %573 = vmatpush.xpose.msk.msrb.mxu0 %vm224_vm1, %v863_v61 }
  0x14   :  { %63 = vperm.xlu1 %594, %v49_v11   ;;  %483 = vmatpush.msra.mxu2 %v175_v15 }
  0x16   :  { %574 = vmatmul.msk.f32.vlgmr.msrb.gmra.mxu0 %vm224_vm1, %v785_v16 }
  0x18   :  { %58 = vperm.xlu2 %595, %v48_v12  }
  0x19   :  { %563 = vmatmul.msk.f32.gmra.mxu2 %vm224_vm1, %v792_v17 }
  0x1c   :  { %53 = vperm.xlu1 %594, %v47_v13  }
  0x1e   :  { %575 = vmatmul.msk.f32.gmra.mxu0 %vm224_vm1, %v792_v17  ;;  %v41_v17 = vld [vmem:[%s914_s6] sm:$0x1]  ;;  %s679_s6 = smov [#allocation4]  }
  0x21   :  { %564 = vmatmul.msk.f32.gmra.mxu2 %vm224_vm1, %v799_v18 }
  0x26   :  { %576 = vmatmul.msk.f32.gmra.mxu0 %vm224_vm1, %v799_v18 }
  0x29   :  { %565 = vmatmul.msk.f32.gmra.mxu2 %vm224_vm1, %v806_v21 }
  0x2e   :  { %577 = vmatmul.msk.f32.gmra.mxu0 %vm224_vm1, %v806_v21 }
  0x62   :  { %v131_v19 = vpop.permute.xlu2 %130 }
  0x6a   :  { %v139_v26 = vpop.permute.xlu2 %138 }
  0x72   :  { %v59_v35 = vpop.permute.xlu2 %58 }
  0x74   :  { %v145_v20 = vpop.permute.xlu0 %144 }
  0x76   :  { %v123_v22 = vpop.permute.xlu1 %122 }
  0x77   :  { %v163_v23 = vsel %vm162_vm2, %v116_v0, %v123_v22 }
  0x78   :  { %v166_v28 = vsel %vm165_vm3, %v163_v23, %v131_v19 }
  0x79   :  { %v169_v31 = vsel %vm168_vm4, %v166_v28, %v139_v26 }
  0x7c   :  { %v151_v24 = vpop.permute.xlu0 %150 }
  0x7d   :  { %v171_v25 = vsel %vm162_vm2, %v145_v20, %v151_v24 }
  0x7e   :  { %v157_v27 = vpop.permute.xlu1 %156 }
  0x7f   :  { %v173_v29 = vsel %vm165_vm3, %v171_v25, %v157_v27 }
  0x80   :  { %555 = vmatpush.msk.msra.mxu1 %vm168_vm4, %v173_v29 }
  0x82   :  { %210 = vmatpush.msra.mxu1 %v169_v31 }
  0x83   :  { %v104_v32 = vpop.f32.mrf.mxu0  ;;  %556 = vmatmul.msk.f32.vlgmr.msra.gmra.mxu1 %vm179_vm5, %v818_v30 }
  0x84   :  { %v69_v34 = vpop.permute.xlu0 %68 }
  0x86   :  { %v64_v33 = vpop.permute.xlu1 %63 }
  0x8a   :  { %v110_v37 = vpop.f32.mrf.mxu2  ;;  %v113_v38 = vpop.f32.mrf.mxu3 }
  0x8b   :  { %v111_v39 = vadd.f32 %v110_v37, %v64_v33  ;;  %v114_v40 = vadd.f32 %v113_v38, %v69_v34  ;;  %v107_v41 = vpop.f32.mrf.mxu0  ;;  %557 = vmatmul.msk.f32.gmra.mxu1 %vm179_vm5, %v826_v36 }
  0x8c   :  { %v108_v42 = vadd.f32 %v107_v41, %v59_v35 }
  0x8d   :  { %289 = vperm.xlu2 %595, %v114_v40   ;;  %284 = vperm.xlu0 %593, %v111_v39  }
  0x8e   :  { %279 = vperm.xlu1 %594, %v108_v42   ;;  %v54_v43 = vpop.permute.xlu1 %53 }
  0x8f   :  { %v105_v45 = vadd.f32 %v104_v32, %v54_v43 }
  0x93   :  { %558 = vmatmul.msk.f32.gmra.mxu1 %vm179_vm5, %v836_v46  ;;  %v378_v28 = vpop.f32.mrf.mxu0 }
  0x94   :  { %v260_v52 = vpop.f32.mrf.mxu2 }
  0x95   :  { %274 = vperm.xlu2 %595, %v105_v45   ;;  %146 = vrot.lane.b32.xlu0 %v117_v44, %s671_s13 }
  0x96   :  { %152 = vrot.lane.b32.xlu1 %v121_v47, %s675_s21  ;;  %596 = vset.pattern.permute.xlu0 %v678_v48 }
  0x97   :  { %597 = vset.pattern.permute.xlu1 %v678_v48 }
  0x9b   :  { %559 = vmatmul.msk.f32.gmra.mxu1 %vm179_vm5, %v845_v49  ;;  %v381_v31 = vpop.f32.mrf.mxu0 }
  0x9c   :  { %v263_v54 = vpop.f32.mrf.mxu2 }
  0x9d   :  { %124 = vrot.lane.b32.xlu2 %v121_v47, %s672_s19  ;;  %158 = vrot.lane.b32.xlu0 %v129_v50, %s676_s24  ;;  %s534_s24 = sshll.u32 %s679_s6, 4  ;;  %s535_s24 = int_to_ptr.vmem [resolvable:$true] %s534_s24 }
  0x9e   :  { %132 = vrot.lane.b32.xlu1 %v129_v50, %s674_s20  ;;  %598 = vset.pattern.permute.xlu2 %v678_v48 }
  0xa3   :  { %v384_v33 = vpop.f32.mrf.mxu0 }
  0xa4   :  { %v266_v57 = vpop.f32.mrf.mxu2 }
  0xa5   :  { %140 = vrot.lane.b32.xlu2 %v137_v51, %s677_s27  ;;  %403 = vperm.xlu0 %596, %v114_v40  }
  0xa6   :  { %399 = vperm.xlu1 %597, %v111_v39  }
  0xab   :  { %v387_v35 = vpop.f32.mrf.mxu0 }
  0xac   :  { %v269_v0 = vpop.f32.mrf.mxu2 }
  0xad   :  { %395 = vperm.xlu2 %598, %v108_v42  }
  0xae   :  { %391 = vperm.xlu1 %597, %v105_v45  }
  0xe7   :  { %v290_v56 = vpop.permute.xlu2 %289 }
  0xef   :  { %v275_v62 = vpop.permute.xlu2 %274 }
  0xf7   :  { %v125_v12 = vpop.permute.xlu2 %124 }
  0xf8   :  { %v164_v15 = vsel %vm162_vm2, %v117_v44, %v125_v12 }
  0xff   :  { %v285_v63 = vpop.permute.xlu0 %284  ;;  %v141_v25 = vpop.permute.xlu2 %140 }
 0x100   :  { %v212_v53 = vpop.f32.mrf.mxu1  ;;  %v280_v60 = vpop.permute.xlu1 %279 }
 0x101   :  { %v261_v5 = vadd.f32 %v260_v52, %v212_v53 }
 0x103   :  { %v292_v11 = vadd.f32 %v275_v62, %v261_v5 }
 0x107   :  { %v147_v10 = vpop.permute.xlu0 %146  ;;  %v396_v43 = vpop.permute.xlu2 %395 }
 0x108   :  { %v215_v55 = vpop.f32.mrf.mxu1  ;;  %v153_v8 = vpop.permute.xlu1 %152 }
 0x109   :  { %v264_v3 = vadd.f32 %v263_v54, %v215_v55  ;;  %v172_v22 = vsel %vm162_vm2, %v147_v10, %v153_v8 }
 0x10b   :  { %v293_v9 = vadd.f32 %v280_v60, %v264_v3 }
 0x10f   :  { %v159_v23 = vpop.permute.xlu0 %158 }
 0x110   :  { %v218_v59 = vpop.f32.mrf.mxu1  ;;  %v133_v19 = vpop.permute.xlu1 %132  ;;  %v174_v26 = vsel %vm165_vm3, %v172_v22, %v159_v23 }
 0x111   :  { %v267_v1 = vadd.f32 %v266_v57, %v218_v59  ;;  %v167_v20 = vsel %vm165_vm3, %v164_v15, %v133_v19 }
 0x112   :  { %v170_v27 = vsel %vm168_vm4, %v167_v20, %v141_v25 }
 0x113   :  { %v294_v6 = vadd.f32 %v285_v63, %v267_v1 }
 0x118   :  { %v221_v2 = vpop.f32.mrf.mxu1  ;;  %v400_v21 = vpop.permute.xlu1 %399 }
 0x119   :  { %v270_v4 = vadd.f32 %v269_v0, %v221_v2 }
 0x11b   :  { %v295_v7 = vadd.f32 %v290_v56, %v270_v4 }
 0x11d   :  { %599 = vtanh.f32 %v295_v7 }
 0x11e   :  { %601 = vtanh.f32 %v294_v6 }
 0x11f   :  { %603 = vtanh.f32 %v293_v9 }
 0x120   :  { %605 = vtanh.f32 %v292_v11  ;;  %v392_v45 = vpop.permute.xlu1 %391 }
 0x123   :  { %v600_v13 = vpop.eup %599 }
 0x124   :  { %315 = vmatpush.msrb.mxu3 %v600_v13  ;;  %v602_v14 = vpop.eup %601 }
 0x125   :  { %v604_v16 = vpop.eup %603 }
 0x126   :  { %316 = vmatpush.msrb.mxu3 %v602_v14  ;;  %v606_v24 = vpop.eup %605 }
 0x128   :  { %317 = vmatpush.msrb.mxu3 %v604_v16 }
 0x12a   :  { %318 = vmatpush.msrb.mxu3 %v606_v24 }
 0x12b   :  { %566 = vmatmul.msk.f32.vlgmr.msrb.gmra.mxu3 %vm71_vm0, %v41_v17 }
 0x12c   :  { %567 = vmatpush.msk.msra.mxu3 %vm168_vm4, %v174_v26 }
 0x12e   :  { %341 = vmatpush.msra.mxu3 %v170_v27 }
 0x133   :  { %568 = vmatmul.msk.f32.vlgmr.msra.gmra.mxu3 %vm179_vm5, %v818_v30 }
 0x13b   :  { %569 = vmatmul.msk.f32.gmra.mxu3 %vm179_vm5, %v826_v36  ;;  %v404_v36 = vpop.permute.xlu0 %403 }
 0x143   :  { %570 = vmatmul.msk.f32.gmra.mxu3 %vm179_vm5, %v836_v46 }
 0x14b   :  { %571 = vmatmul.msk.f32.gmra.mxu3 %vm179_vm5, %v845_v49 }
 0x1ae   :  { %v320_v18 = vpop.f32.mrf.mxu3 }
 0x1b6   :  { %v343_v29 = vpop.f32.mrf.mxu3 }
 0x1b7   :  { %v379_v40 = vadd.f32 %v378_v28, %v343_v29 }
 0x1b9   :  { %v406_v46 = vadd.f32 %v392_v45, %v379_v40 }
 0x1be   :  { %v346_v32 = vpop.f32.mrf.mxu3 }
 0x1bf   :  { %v382_v38 = vadd.f32 %v381_v31, %v346_v32 }
 0x1c1   :  { %v407_v44 = vadd.f32 %v396_v43, %v382_v38 }
 0x1c6   :  { %v349_v34 = vpop.f32.mrf.mxu3 }
 0x1c7   :  { %v385_v37 = vadd.f32 %v384_v33, %v349_v34 }
 0x1c9   :  { %v408_v41 = vadd.f32 %v400_v21, %v385_v37 }
 0x1ce   :  { %v352_v30 = vpop.f32.mrf.mxu3 }
 0x1cf   :  { %v388_v39 = vadd.f32 %v387_v35, %v352_v30 }
 0x1d1   :  { %v409_v42 = vadd.f32 %v404_v36, %v388_v39 }
 0x1d3   :  { %607 = vtanh.f32 %v409_v42 }
 0x1d4   :  { %609 = vtanh.f32 %v408_v41 }
 0x1d5   :  { %611 = vtanh.f32 %v407_v44 }
 0x1d6   :  { %613 = vtanh.f32 %v406_v46 }
 0x1d9   :  { %v608_v47 = vpop.eup %607 }
 0x1da   :  { %426 = vmatpush.msrb.mxu1 %v608_v47  ;;  %v610_v48 = vpop.eup %609 }
 0x1db   :  { %v612_v49 = vpop.eup %611 }
 0x1dc   :  { %427 = vmatpush.msrb.mxu1 %v610_v48  ;;  %v614_v50 = vpop.eup %613 }
 0x1de   :  { %428 = vmatpush.msrb.mxu1 %v612_v49 }
 0x1e0   :  { %429 = vmatpush.msrb.mxu1 %v614_v50 }
 0x1e1   :  { %578 = vmatmul.msk.f32.vlgmr.msrb.gmra.mxu1 %vm71_vm0, %v41_v17 }
 0x1e2   :  { %504 = vmatpush.msra.mxu1 %v856_v58 }
 0x1e4   :  { %505 = vmatpush.msra.mxu1 %v863_v61 }
 0x25e   :  { %v431_v51 = vpop.f32.mrf.mxu1 }
 0x25f   :  { %v435_v52 = vrot.slane %v431_v51, 7 }
 0x261   :  { %v438_v53 = vsel %vm437_vm6, %v320_v18, %v435_v52 }
 0x262   :  { %v440_v54 = vsel %vm439_vm7, %v438_v53, -inf }
 0x263   :  { %441 = vmax.xlane.f32.xlu2 %v440_v54 }
 0x2d6   :  { %v442_v55 = vpop.xlane.xlu2 %441 }
 0x2d7   :  { %v443_v56 = vsub.f32 %v438_v53, %v442_v55 }
 0x2d9   :  { %v444_v57 = vmul.f32 1.442695, %v443_v56 }
 0x2db   :  { %615 = vpow2.f32 %v444_v57 }
 0x2e1   :  { %v616_v59 = vpop.eup %615 }
 0x2e2   :  { %v446_v60 = vsel %vm439_vm7, %v616_v59, 0.0 }
 0x2e3   :  { %447 = vadd.xlane.f32.xlu0 %v446_v60 }
 0x356   :  { %v448_v62 = vpop.xlane.xlu0 %447 }
 0x357   :  { %617 = vrcp.f32 %v448_v62  ;;  %v460_v0 = vand.u32 2147483648, %v448_v62  ;;  %v458_v2 = vand.u32 2147483647, %v448_v62  ;;  %vm454_vm9 = vweird.f32 %v448_v62 }
 0x359   :  { %v461_v4 = vor.u32 1.1754944e-38, %v460_v0  ;;  %vm459_vm11 = vcmp.eq.f32.partialorder %v458_v2, 8.507059e+37 }
 0x35d   :  { %v618_v58 = vpop.eup %617 }
 0x35e   :  { %v450_v61 = vmul.f32 %v618_v58, %v448_v62  ;;  %vm455_vm8 = vweird.f32 %v618_v58 }
 0x35f   :  { %vm456_vm10 = vmor %vm454_vm9, %vm455_vm8 }
 0x360   :  { %v451_v63 = vsub.f32 1.0, %v450_v61 }
 0x362   :  { %v452_v1 = vmul.f32 %v618_v58, %v451_v63 }
 0x364   :  { %v453_v3 = vadd.f32 %v618_v58, %v452_v1 }
 0x366   :  { %v457_v5 = vsel %vm456_vm10, %v618_v58, %v453_v3 }
 0x367   :  { %v462_v6 = vsel %vm459_vm11, %v461_v4, %v457_v5 }
 0x368   :  { %v463_v7 = vmul.f32 %v616_v59, %v462_v6 }
 0x36a   :  { %517 = vst.msk [vmem:[#allocation4] sm:$0x3] %vm439_vm7, %v463_v7  ;;  %579 = vmatmul.msk.f32.vlgmr.msra.gmra.mxu2 %vm224_vm1, %v463_v7  ;;  %v465_v8 = vrot.slane %v463_v7, 1 }
 0x36b   :  { %539 = dma.vmem_to_hbm [thread:$0]  %s535_s24, 32, %s537_s16, [#allocation5]  }
 0x36c   :  { %580 = vmatmul.msk.f32.vlgmr.msra.gmra.mxu1 %vm224_vm1, %v465_v8 }
 0x3e9   :  { %v507_v9 = vpop.f32.mrf.mxu1 }
 0x3ea   :  { %v512_v10 = vrot.slane %v507_v9, 7 }
 0x3ed   :  { %v485_v11 = vpop.f32.mrf.mxu2 }
 0x3ee   :  { %v514_v12 = vsel %vm513_vm12, %v512_v10, %v485_v11 }
 0x3ef   :  { %516 = vst.msk [vmem:[#allocation2] sm:$0x3] %vm439_vm7, %v514_v12 }
 0x3f0   :  { %528 = dma.vmem_to_hbm [thread:$0]  %s524_s0, 32, %s526_s22, [#allocation3]  }
 0x3f1   :  { %667 = dma.done.wait [#allocation3], 32  }
 0x3f2   :  { %668 = vsyncadd [#allocation3], 4294967264 }
 0x3f3   :  { %669 = dma.done.wait [#allocation5], 32  }
 0x3f4   :  { %670 = vsyncadd [#allocation5], 4294967264 }
 0x3f5   :  { %548 = vsyncpa [#allocation3], 1 }
 0x3f6   :  { %549 = vsyncpa [#allocation5], 1 }

</bundles_post_ra>
